<compile_context>
chip_gen: v7x
topology: tpu7x:2x2x1
jax: 0.10.0
libtpu: 0.0.40
codegen_flags: <defaults>
</compile_context>

<pallas_src>
import functools

import jax
import jax.numpy as jnp
from jax.experimental import pallas as pl
from jax.experimental.pallas import tpu as pltpu


LANE = 128
SUBLANE = 8

_W_ORDER = ("ew1", "ew2", "ew3", "tw1", "tw2o", "tw2a", "tw3", "tw4",
            "dw1", "dw2", "dw3")
_B_ORDER = ("eb1", "eb2", "eb3", "tb1", "tb2", "tb3", "tb4",
            "db1", "db2", "db3")


# ----------------------------- Pallas kernel --------------------------------
def _one_step_kernel(w_index, b_index, bpad,
                     obs_pair_ref, act_ref, w_ref, b_ref,
                     dec_pair_ref, dec_pred_ref, pred_ref):
    """Fused OneStep.forward (single block, everything VMEM-resident).

    obs_pair_ref : [2*Bpad, 128]  rows 0..Bpad-1 = obs, Bpad..2*Bpad-1 = next_obs
    act_ref      : [Bpad, 128]
    w_ref        : [11, 128, 128] one full MXU tile per weight (static index)
    b_ref        : [10*2*Bpad, 128] biases pre-broadcast across sublanes
    dec_pair_ref : [2*Bpad, 128]  decoded_obs / decoded_next_obs (lane-dense)
    dec_pred_ref : [Bpad, 128]    decoded_pred_next_obs (lane-dense)
    pred_ref     : [Bpad, 128]    pred_latent_next_obs (lane-dense)
    """

    def wview(name):
        return w_ref[w_index[name]]                       # [128, 128] full tile

    def bias(name, rows):
        r0 = b_index[name] * (2 * bpad)                   # static, 8-aligned
        return b_ref[r0:r0 + rows, :]                     # [rows, 128]

    def lin(x, wn, bn):
        y = jnp.dot(x, wview(wn), preferred_element_type=jnp.float32)
        return y + bias(bn, x.shape[0])

    def relu(z):
        return jnp.maximum(z, 0.0)

    def encoder(x):
        h = relu(lin(x, "ew1", "eb1"))
        h = relu(lin(h, "ew2", "eb2"))
        return lin(h, "ew3", "eb3")

    def decoder(z):
        h = relu(lin(z, "dw1", "db1"))
        h = relu(lin(h, "dw2", "db2"))
        return lin(h, "dw3", "db3")

    # --- encoder: one pass over [obs ; next_obs] -----------------------------
    lat_pair = encoder(obs_pair_ref[...])                 # [2*Bpad, 128]

    # Decoder over encoder latents is independent of the transition chain, so
    # its MXU pushes overlap the transition's (LLO interleaves independent dots).
    dec_pair_ref[...] = decoder(lat_pair)

    # --- transition: relu(fc1(act)); cat([latent, a]) realised as split fc2 ---
    latent_obs = lat_pair[:bpad]                          # [Bpad, 128], aligned
    a_feat = relu(lin(act_ref[...], "tw1", "tb1"))        # [Bpad, 128]
    h = relu(
        jnp.dot(latent_obs, wview("tw2o"), preferred_element_type=jnp.float32)
        + jnp.dot(a_feat, wview("tw2a"), preferred_element_type=jnp.float32)
        + bias("tb2", bpad)
    )
    h = relu(lin(h, "tw3", "tb3"))
    pred_latent = lin(h, "tw4", "tb4")                    # [Bpad, 128]

    pred_ref[...] = pred_latent
    dec_pred_ref[...] = decoder(pred_latent)


# --------------------------- parameter packing --------------------------------
def pack_params(p, bias_rows):
    """Packs weights into [11,128,128] full MXU tiles and biases into a
    [10*bias_rows, 128] slab pre-broadcast across sublanes."""
    w_tiles, w_index = [], {}
    for i, name in enumerate(_W_ORDER):
        w = jnp.asarray(p[name], jnp.float32)
        rin, cout = w.shape
        assert rin <= LANE and cout <= LANE, (
            f"{name}: fan-in/out must be <= {LANE} for the single-tile layout")
        w_tiles.append(jnp.zeros((LANE, LANE), jnp.float32).at[:rin, :cout].set(w))
        w_index[name] = i
    w_slab = jnp.stack(w_tiles, axis=0)                   # [11, 128, 128]

    b_blocks, b_index = [], {}
    for i, name in enumerate(_B_ORDER):
        b = jnp.asarray(p[name], jnp.float32).reshape(1, -1)
        cout = b.shape[1]
        assert cout <= LANE, f"{name}: bias width must be <= {LANE}"
        blk = jnp.zeros((bias_rows, LANE), jnp.float32).at[:, :cout].set(
            jnp.broadcast_to(b, (bias_rows, cout)))
        b_blocks.append(blk)
        b_index[name] = i
    b_slab = jnp.concatenate(b_blocks, axis=0)            # [10*bias_rows, 128]

    return w_slab, b_slab, w_index, b_index


# ------------------------------ wrapper --------------------------------------
def build_one_step(params, input_dim, action_dim, latent_dim, batch):
    """Packs parameters once and returns a jitted forward(obs, action, next_obs)."""
    assert input_dim <= LANE and action_dim <= LANE and latent_dim <= LANE
    bpad = -(-batch // SUBLANE) * SUBLANE                 # batch padded to sublane
    assert bpad % SUBLANE == 0

    w_slab, b_slab, w_index, b_index = pack_params(params, bias_rows=2 * bpad)

    kernel = functools.partial(_one_step_kernel, w_index, b_index, bpad)
    vmem = pl.BlockSpec(memory_space=pltpu.MemorySpace.VMEM)

    fused = pl.pallas_call(
        kernel,
        out_shape=(
            jax.ShapeDtypeStruct((2 * bpad, LANE), jnp.float32),   # decoder(lat_pair)
            jax.ShapeDtypeStruct((bpad, LANE), jnp.float32),       # decoder(pred_latent)
            jax.ShapeDtypeStruct((bpad, LANE), jnp.float32),       # pred_latent
        ),
        in_specs=[vmem, vmem, vmem, vmem],
        out_specs=(vmem, vmem, vmem),
    )

    @jax.jit
    def forward(obs, action, next_obs):
        # Lane/sublane-dense, zero-padded stacking (all inside the jit).
        obs_pair = jnp.zeros((2 * bpad, LANE), jnp.float32)
        obs_pair = obs_pair.at[:batch, :input_dim].set(obs)
        obs_pair = obs_pair.at[bpad:bpad + batch, :input_dim].set(next_obs)
        act = jnp.zeros((bpad, LANE), jnp.float32).at[:batch, :action_dim].set(action)

        dec_pair, dec_pred, pred = fused(obs_pair, act, w_slab, b_slab)

        decoded_obs = dec_pair[:batch, :input_dim]
        decoded_next_obs = dec_pair[bpad:bpad + batch, :input_dim]
        decoded_pred_next_obs = dec_pred[:batch, :input_dim]
        pred_latent = pred[:batch, :latent_dim]
        return decoded_obs, decoded_next_obs, decoded_pred_next_obs, pred_latent

    return forward


# --------------------------- parameter setup ---------------------------------
def init_params(key, input_dim, action_dim, latent_dim):
    """Deterministic synthetic init. Weights are [in, out], biases [1, out]."""
    def lin_init(k, fan_in, fan_out):
        kw, kb = jax.random.split(k)
        bound = 1.0 / jnp.sqrt(jnp.float32(fan_in))
        w = jax.random.uniform(kw, (fan_in, fan_out), jnp.float32, -bound, bound)
        b = jax.random.uniform(kb, (1, fan_out), jnp.float32, -bound, bound)
        return w, b

    keys = jax.random.split(key, 10)
    p = {}
    # Encoder: input_dim -> 64 -> 32 -> latent_dim
    p["ew1"], p["eb1"] = lin_init(keys[0], input_dim, 64)
    p["ew2"], p["eb2"] = lin_init(keys[1], 64, 32)
    p["ew3"], p["eb3"] = lin_init(keys[2], 32, latent_dim)
    # Transition: action_dim -> 8 ; (latent_dim + 8) -> 64 -> 32 -> latent_dim
    p["tw1"], p["tb1"] = lin_init(keys[3], action_dim, 8)
    tw2, p["tb2"] = lin_init(keys[4], latent_dim + 8, 64)
    p["tw2o"] = tw2[:latent_dim, :]   # rows applied to latent_obs
    p["tw2a"] = tw2[latent_dim:, :]   # rows applied to action features
    p["tw3"], p["tb3"] = lin_init(keys[5], 64, 32)
    p["tw4"], p["tb4"] = lin_init(keys[6], 32, latent_dim)
    # Decoder: latent_dim -> 32 -> 64 -> input_dim
    p["dw1"], p["db1"] = lin_init(keys[7], latent_dim, 32)
    p["dw2"], p["db2"] = lin_init(keys[8], 32, 64)
    p["dw3"], p["db3"] = lin_init(keys[9], 64, input_dim)
    return p


# --------------------------- pure-JAX reference -------------------------------
def one_step_reference(obs, action, next_obs, p):
    relu = lambda z: jnp.maximum(z, 0.0)
    lin = lambda x, w, b: x @ w + b

    def encoder(x):
        h = relu(lin(x, p["ew1"], p["eb1"]))
        h = relu(lin(h, p["ew2"], p["eb2"]))
        return lin(h, p["ew3"], p["eb3"])

    def decoder(z):
        h = relu(lin(z, p["dw1"], p["db1"]))
        h = relu(lin(h, p["dw2"], p["db2"]))
        return lin(h, p["dw3"], p["db3"])

    lat = encoder(obs)
    lat_next = encoder(next_obs)
    a = relu(lin(action, p["tw1"], p["tb1"]))
    x = jnp.concatenate([lat, a], axis=1)
    w2 = jnp.concatenate([p["tw2o"], p["tw2a"]], axis=0)
    h = relu(lin(x, w2, p["tb2"]))
    h = relu(lin(h, p["tw3"], p["tb3"]))
    pred_lat = lin(h, p["tw4"], p["tb4"])
    return decoder(lat), decoder(lat_next), decoder(pred_lat), pred_lat


# --------------------------------- main ---------------------------------------
if __name__ == "__main__":
    B, INPUT_DIM, ACTION_DIM, LATENT_DIM = 2, 16, 4, 8

    key = jax.random.PRNGKey(0)
    k_obs, k_act, k_nobs, k_params = jax.random.split(key, 4)

    obs = jax.random.normal(k_obs, (B, INPUT_DIM), jnp.float32)
    action = jax.random.normal(k_act, (B, ACTION_DIM), jnp.float32)
    next_obs = jax.random.normal(k_nobs, (B, INPUT_DIM), jnp.float32)

    params = init_params(k_params, INPUT_DIM, ACTION_DIM, LATENT_DIM)

    # Pack parameters / build the jitted fused forward once.
    one_step = build_one_step(params, INPUT_DIM, ACTION_DIM, LATENT_DIM, B)

    outs = one_step(obs, action, next_obs)
    outs = jax.block_until_ready(outs)

    refs = one_step_reference(obs, action, next_obs, params)
    for o, r in zip(outs, refs):
        assert o.shape == r.shape and o.dtype == r.dtype
        assert jnp.allclose(o, r, atol=1e-5, rtol=1e-5), "mismatch vs reference"

    print("KERNEL_OK")
</pallas_src>

<mosaic_0001>
module attributes {stable_mosaic.version = 11 : i64} {
  func.func @_one_step_kernel(%arg0: memref<16x128xf32, #tpu.memory_space<vmem>>, %arg1: memref<8x128xf32, #tpu.memory_space<vmem>>, %arg2: memref<11x128x128xf32, #tpu.memory_space<vmem>>, %arg3: memref<160x128xf32, #tpu.memory_space<vmem>>, %arg4: memref<16x128xf32, #tpu.memory_space<vmem>>, %arg5: memref<8x128xf32, #tpu.memory_space<vmem>>, %arg6: memref<8x128xf32, #tpu.memory_space<vmem>>) attributes {dimension_semantics = [], scalar_prefetch = 0 : i64, scratch_operands = 0 : i64, tpu.core_type = #tpu.core_type<tc>} {
    %c0 = arith.constant 0 : index
    %c0_0 = arith.constant 0 : index
    %0 = vector.load %arg0[%c0, %c0_0] : memref<16x128xf32, #tpu.memory_space<vmem>>, vector<16x128xf32>
    %c0_1 = arith.constant 0 : index
    %c0_2 = arith.constant 0 : index
    %c0_3 = arith.constant 0 : index
    %1 = vector.load %arg2[%c0_1, %c0_2, %c0_3] : memref<11x128x128xf32, #tpu.memory_space<vmem>>, vector<1x128x128xf32>
    %2 = vector.shape_cast %1 : vector<1x128x128xf32> to vector<128x128xf32>
    %cst = arith.constant dense<0.000000e+00> : vector<16x128xf32>
    %3 = tpu.matmul %0, %2, %cst {dimension_numbers = #tpu.dot_dimension_numbers<[1], [0], [0], [1], [0, 0, 1, 1], [], []>} : vector<16x128xf32>, vector<128x128xf32>, vector<16x128xf32> -> vector<16x128xf32>
    %c0_4 = arith.constant 0 : index
    %c0_5 = arith.constant 0 : index
    %4 = vector.load %arg3[%c0_4, %c0_5] : memref<160x128xf32, #tpu.memory_space<vmem>>, vector<16x128xf32>
    %5 = arith.addf %3, %4 : vector<16x128xf32>
    %cst_6 = arith.constant 0.000000e+00 : f32
    %6 = vector.broadcast %cst_6 : f32 to vector<16x128xf32>
    %7 = arith.maximumf %5, %6 : vector<16x128xf32>
    %c1 = arith.constant 1 : index
    %c0_7 = arith.constant 0 : index
    %c0_8 = arith.constant 0 : index
    %8 = vector.load %arg2[%c1, %c0_7, %c0_8] : memref<11x128x128xf32, #tpu.memory_space<vmem>>, vector<1x128x128xf32>
    %9 = vector.shape_cast %8 : vector<1x128x128xf32> to vector<128x128xf32>
    %cst_9 = arith.constant dense<0.000000e+00> : vector<16x128xf32>
    %10 = tpu.matmul %7, %9, %cst_9 {dimension_numbers = #tpu.dot_dimension_numbers<[1], [0], [0], [1], [0, 0, 1, 1], [], []>} : vector<16x128xf32>, vector<128x128xf32>, vector<16x128xf32> -> vector<16x128xf32>
    %c16 = arith.constant 16 : index
    %c0_10 = arith.constant 0 : index
    %11 = vector.load %arg3[%c16, %c0_10] : memref<160x128xf32, #tpu.memory_space<vmem>>, vector<16x128xf32>
    %12 = arith.addf %10, %11 : vector<16x128xf32>
    %cst_11 = arith.constant 0.000000e+00 : f32
    %13 = vector.broadcast %cst_11 : f32 to vector<16x128xf32>
    %14 = arith.maximumf %12, %13 : vector<16x128xf32>
    %c2 = arith.constant 2 : index
    %c0_12 = arith.constant 0 : index
    %c0_13 = arith.constant 0 : index
    %15 = vector.load %arg2[%c2, %c0_12, %c0_13] : memref<11x128x128xf32, #tpu.memory_space<vmem>>, vector<1x128x128xf32>
    %16 = vector.shape_cast %15 : vector<1x128x128xf32> to vector<128x128xf32>
    %cst_14 = arith.constant dense<0.000000e+00> : vector<16x128xf32>
    %17 = tpu.matmul %14, %16, %cst_14 {dimension_numbers = #tpu.dot_dimension_numbers<[1], [0], [0], [1], [0, 0, 1, 1], [], []>} : vector<16x128xf32>, vector<128x128xf32>, vector<16x128xf32> -> vector<16x128xf32>
    %c32 = arith.constant 32 : index
    %c0_15 = arith.constant 0 : index
    %18 = vector.load %arg3[%c32, %c0_15] : memref<160x128xf32, #tpu.memory_space<vmem>>, vector<16x128xf32>
    %19 = arith.addf %17, %18 : vector<16x128xf32>
    %c8 = arith.constant 8 : index
    %c0_16 = arith.constant 0 : index
    %c0_17 = arith.constant 0 : index
    %20 = vector.load %arg2[%c8, %c0_16, %c0_17] : memref<11x128x128xf32, #tpu.memory_space<vmem>>, vector<1x128x128xf32>
    %21 = vector.shape_cast %20 : vector<1x128x128xf32> to vector<128x128xf32>
    %cst_18 = arith.constant dense<0.000000e+00> : vector<16x128xf32>
    %22 = tpu.matmul %19, %21, %cst_18 {dimension_numbers = #tpu.dot_dimension_numbers<[1], [0], [0], [1], [0, 0, 1, 1], [], []>} : vector<16x128xf32>, vector<128x128xf32>, vector<16x128xf32> -> vector<16x128xf32>
    %c112 = arith.constant 112 : index
    %c0_19 = arith.constant 0 : index
    %23 = vector.load %arg3[%c112, %c0_19] : memref<160x128xf32, #tpu.memory_space<vmem>>, vector<16x128xf32>
    %24 = arith.addf %22, %23 : vector<16x128xf32>
    %cst_20 = arith.constant 0.000000e+00 : f32
    %25 = vector.broadcast %cst_20 : f32 to vector<16x128xf32>
    %26 = arith.maximumf %24, %25 : vector<16x128xf32>
    %c9 = arith.constant 9 : index
    %c0_21 = arith.constant 0 : index
    %c0_22 = arith.constant 0 : index
    %27 = vector.load %arg2[%c9, %c0_21, %c0_22] : memref<11x128x128xf32, #tpu.memory_space<vmem>>, vector<1x128x128xf32>
    %28 = vector.shape_cast %27 : vector<1x128x128xf32> to vector<128x128xf32>
    %cst_23 = arith.constant dense<0.000000e+00> : vector<16x128xf32>
    %29 = tpu.matmul %26, %28, %cst_23 {dimension_numbers = #tpu.dot_dimension_numbers<[1], [0], [0], [1], [0, 0, 1, 1], [], []>} : vector<16x128xf32>, vector<128x128xf32>, vector<16x128xf32> -> vector<16x128xf32>
    %c128 = arith.constant 128 : index
    %c0_24 = arith.constant 0 : index
    %30 = vector.load %arg3[%c128, %c0_24] : memref<160x128xf32, #tpu.memory_space<vmem>>, vector<16x128xf32>
    %31 = arith.addf %29, %30 : vector<16x128xf32>
    %cst_25 = arith.constant 0.000000e+00 : f32
    %32 = vector.broadcast %cst_25 : f32 to vector<16x128xf32>
    %33 = arith.maximumf %31, %32 : vector<16x128xf32>
    %c10 = arith.constant 10 : index
    %c0_26 = arith.constant 0 : index
    %c0_27 = arith.constant 0 : index
    %34 = vector.load %arg2[%c10, %c0_26, %c0_27] : memref<11x128x128xf32, #tpu.memory_space<vmem>>, vector<1x128x128xf32>
    %35 = vector.shape_cast %34 : vector<1x128x128xf32> to vector<128x128xf32>
    %cst_28 = arith.constant dense<0.000000e+00> : vector<16x128xf32>
    %36 = tpu.matmul %33, %35, %cst_28 {dimension_numbers = #tpu.dot_dimension_numbers<[1], [0], [0], [1], [0, 0, 1, 1], [], []>} : vector<16x128xf32>, vector<128x128xf32>, vector<16x128xf32> -> vector<16x128xf32>
    %c144 = arith.constant 144 : index
    %c0_29 = arith.constant 0 : index
    %37 = vector.load %arg3[%c144, %c0_29] : memref<160x128xf32, #tpu.memory_space<vmem>>, vector<16x128xf32>
    %38 = arith.addf %36, %37 : vector<16x128xf32>
    %c0_30 = arith.constant 0 : index
    %c0_31 = arith.constant 0 : index
    %39 = vector.load %arg4[%c0_30, %c0_31] : memref<16x128xf32, #tpu.memory_space<vmem>>, vector<16x128xf32>
    tpu.vector_store %arg4[%c0_30, %c0_31], %38 {strides = array<i32>} : memref<16x128xf32, #tpu.memory_space<vmem>>, vector<16x128xf32>,
    %40 = vector.extract_strided_slice %19 {offsets = [0, 0], sizes = [8, 128], strides = [1, 1]} : vector<16x128xf32> to vector<8x128xf32>
    %c0_32 = arith.constant 0 : index
    %c0_33 = arith.constant 0 : index
    %41 = vector.load %arg1[%c0_32, %c0_33] : memref<8x128xf32, #tpu.memory_space<vmem>>, vector<8x128xf32>
    %c3 = arith.constant 3 : index
    %c0_34 = arith.constant 0 : index
    %c0_35 = arith.constant 0 : index
    %42 = vector.load %arg2[%c3, %c0_34, %c0_35] : memref<11x128x128xf32, #tpu.memory_space<vmem>>, vector<1x128x128xf32>
    %43 = vector.shape_cast %42 : vector<1x128x128xf32> to vector<128x128xf32>
    %cst_36 = arith.constant dense<0.000000e+00> : vector<8x128xf32>
    %44 = tpu.matmul %41, %43, %cst_36 {dimension_numbers = #tpu.dot_dimension_numbers<[1], [0], [0], [1], [0, 0, 1, 1], [], []>} : vector<8x128xf32>, vector<128x128xf32>, vector<8x128xf32> -> vector<8x128xf32>
    %c48 = arith.constant 48 : index
    %c0_37 = arith.constant 0 : index
    %45 = vector.load %arg3[%c48, %c0_37] : memref<160x128xf32, #tpu.memory_space<vmem>>, vector<8x128xf32>
    %46 = arith.addf %44, %45 : vector<8x128xf32>
    %cst_38 = arith.constant 0.000000e+00 : f32
    %47 = vector.broadcast %cst_38 : f32 to vector<8x128xf32>
    %48 = arith.maximumf %46, %47 : vector<8x128xf32>
    %c4 = arith.constant 4 : index
    %c0_39 = arith.constant 0 : index
    %c0_40 = arith.constant 0 : index
    %49 = vector.load %arg2[%c4, %c0_39, %c0_40] : memref<11x128x128xf32, #tpu.memory_space<vmem>>, vector<1x128x128xf32>
    %50 = vector.shape_cast %49 : vector<1x128x128xf32> to vector<128x128xf32>
    %cst_41 = arith.constant dense<0.000000e+00> : vector<8x128xf32>
    %51 = tpu.matmul %40, %50, %cst_41 {dimension_numbers = #tpu.dot_dimension_numbers<[1], [0], [0], [1], [0, 0, 1, 1], [], []>} : vector<8x128xf32>, vector<128x128xf32>, vector<8x128xf32> -> vector<8x128xf32>
    %c5 = arith.constant 5 : index
    %c0_42 = arith.constant 0 : index
    %c0_43 = arith.constant 0 : index
    %52 = vector.load %arg2[%c5, %c0_42, %c0_43] : memref<11x128x128xf32, #tpu.memory_space<vmem>>, vector<1x128x128xf32>
    %53 = vector.shape_cast %52 : vector<1x128x128xf32> to vector<128x128xf32>
    %cst_44 = arith.constant dense<0.000000e+00> : vector<8x128xf32>
    %54 = tpu.matmul %48, %53, %cst_44 {dimension_numbers = #tpu.dot_dimension_numbers<[1], [0], [0], [1], [0, 0, 1, 1], [], []>} : vector<8x128xf32>, vector<128x128xf32>, vector<8x128xf32> -> vector<8x128xf32>
    %55 = arith.addf %51, %54 : vector<8x128xf32>
    %c64 = arith.constant 64 : index
    %c0_45 = arith.constant 0 : index
    %56 = vector.load %arg3[%c64, %c0_45] : memref<160x128xf32, #tpu.memory_space<vmem>>, vector<8x128xf32>
    %57 = arith.addf %55, %56 : vector<8x128xf32>
    %cst_46 = arith.constant 0.000000e+00 : f32
    %58 = vector.broadcast %cst_46 : f32 to vector<8x128xf32>
    %59 = arith.maximumf %57, %58 : vector<8x128xf32>
    %c6 = arith.constant 6 : index
    %c0_47 = arith.constant 0 : index
    %c0_48 = arith.constant 0 : index
    %60 = vector.load %arg2[%c6, %c0_47, %c0_48] : memref<11x128x128xf32, #tpu.memory_space<vmem>>, vector<1x128x128xf32>
    %61 = vector.shape_cast %60 : vector<1x128x128xf32> to vector<128x128xf32>
    %cst_49 = arith.constant dense<0.000000e+00> : vector<8x128xf32>
    %62 = tpu.matmul %59, %61, %cst_49 {dimension_numbers = #tpu.dot_dimension_numbers<[1], [0], [0], [1], [0, 0, 1, 1], [], []>} : vector<8x128xf32>, vector<128x128xf32>, vector<8x128xf32> -> vector<8x128xf32>
    %c80 = arith.constant 80 : index
    %c0_50 = arith.constant 0 : index
    %63 = vector.load %arg3[%c80, %c0_50] : memref<160x128xf32, #tpu.memory_space<vmem>>, vector<8x128xf32>
    %64 = arith.addf %62, %63 : vector<8x128xf32>
    %cst_51 = arith.constant 0.000000e+00 : f32
    %65 = vector.broadcast %cst_51 : f32 to vector<8x128xf32>
    %66 = arith.maximumf %64, %65 : vector<8x128xf32>
    %c7 = arith.constant 7 : index
    %c0_52 = arith.constant 0 : index
    %c0_53 = arith.constant 0 : index
    %67 = vector.load %arg2[%c7, %c0_52, %c0_53] : memref<11x128x128xf32, #tpu.memory_space<vmem>>, vector<1x128x128xf32>
    %68 = vector.shape_cast %67 : vector<1x128x128xf32> to vector<128x128xf32>
    %cst_54 = arith.constant dense<0.000000e+00> : vector<8x128xf32>
    %69 = tpu.matmul %66, %68, %cst_54 {dimension_numbers = #tpu.dot_dimension_numbers<[1], [0], [0], [1], [0, 0, 1, 1], [], []>} : vector<8x128xf32>, vector<128x128xf32>, vector<8x128xf32> -> vector<8x128xf32>
    %c96 = arith.constant 96 : index
    %c0_55 = arith.constant 0 : index
    %70 = vector.load %arg3[%c96, %c0_55] : memref<160x128xf32, #tpu.memory_space<vmem>>, vector<8x128xf32>
    %71 = arith.addf %69, %70 : vector<8x128xf32>
    %c0_56 = arith.constant 0 : index
    %c0_57 = arith.constant 0 : index
    %72 = vector.load %arg6[%c0_56, %c0_57] : memref<8x128xf32, #tpu.memory_space<vmem>>, vector<8x128xf32>
    tpu.vector_store %arg6[%c0_56, %c0_57], %71 {strides = array<i32>} : memref<8x128xf32, #tpu.memory_space<vmem>>, vector<8x128xf32>,
    %c8_58 = arith.constant 8 : index
    %c0_59 = arith.constant 0 : index
    %c0_60 = arith.constant 0 : index
    %73 = vector.load %arg2[%c8_58, %c0_59, %c0_60] : memref<11x128x128xf32, #tpu.memory_space<vmem>>, vector<1x128x128xf32>
    %74 = vector.shape_cast %73 : vector<1x128x128xf32> to vector<128x128xf32>
    %cst_61 = arith.constant dense<0.000000e+00> : vector<8x128xf32>
    %75 = tpu.matmul %71, %74, %cst_61 {dimension_numbers = #tpu.dot_dimension_numbers<[1], [0], [0], [1], [0, 0, 1, 1], [], []>} : vector<8x128xf32>, vector<128x128xf32>, vector<8x128xf32> -> vector<8x128xf32>
    %c112_62 = arith.constant 112 : index
    %c0_63 = arith.constant 0 : index
    %76 = vector.load %arg3[%c112_62, %c0_63] : memref<160x128xf32, #tpu.memory_space<vmem>>, vector<8x128xf32>
    %77 = arith.addf %75, %76 : vector<8x128xf32>
    %cst_64 = arith.constant 0.000000e+00 : f32
    %78 = vector.broadcast %cst_64 : f32 to vector<8x128xf32>
    %79 = arith.maximumf %77, %78 : vector<8x128xf32>
    %c9_65 = arith.constant 9 : index
    %c0_66 = arith.constant 0 : index
    %c0_67 = arith.constant 0 : index
    %80 = vector.load %arg2[%c9_65, %c0_66, %c0_67] : memref<11x128x128xf32, #tpu.memory_space<vmem>>, vector<1x128x128xf32>
    %81 = vector.shape_cast %80 : vector<1x128x128xf32> to vector<128x128xf32>
    %cst_68 = arith.constant dense<0.000000e+00> : vector<8x128xf32>
    %82 = tpu.matmul %79, %81, %cst_68 {dimension_numbers = #tpu.dot_dimension_numbers<[1], [0], [0], [1], [0, 0, 1, 1], [], []>} : vector<8x128xf32>, vector<128x128xf32>, vector<8x128xf32> -> vector<8x128xf32>
    %c128_69 = arith.constant 128 : index
    %c0_70 = arith.constant 0 : index
    %83 = vector.load %arg3[%c128_69, %c0_70] : memref<160x128xf32, #tpu.memory_space<vmem>>, vector<8x128xf32>
    %84 = arith.addf %82, %83 : vector<8x128xf32>
    %cst_71 = arith.constant 0.000000e+00 : f32
    %85 = vector.broadcast %cst_71 : f32 to vector<8x128xf32>
    %86 = arith.maximumf %84, %85 : vector<8x128xf32>
    %c10_72 = arith.constant 10 : index
    %c0_73 = arith.constant 0 : index
    %c0_74 = arith.constant 0 : index
    %87 = vector.load %arg2[%c10_72, %c0_73, %c0_74] : memref<11x128x128xf32, #tpu.memory_space<vmem>>, vector<1x128x128xf32>
    %88 = vector.shape_cast %87 : vector<1x128x128xf32> to vector<128x128xf32>
    %cst_75 = arith.constant dense<0.000000e+00> : vector<8x128xf32>
    %89 = tpu.matmul %86, %88, %cst_75 {dimension_numbers = #tpu.dot_dimension_numbers<[1], [0], [0], [1], [0, 0, 1, 1], [], []>} : vector<8x128xf32>, vector<128x128xf32>, vector<8x128xf32> -> vector<8x128xf32>
    %c144_76 = arith.constant 144 : index
    %c0_77 = arith.constant 0 : index
    %90 = vector.load %arg3[%c144_76, %c0_77] : memref<160x128xf32, #tpu.memory_space<vmem>>, vector<8x128xf32>
    %91 = arith.addf %89, %90 : vector<8x128xf32>
    %c0_78 = arith.constant 0 : index
    %c0_79 = arith.constant 0 : index
    %92 = vector.load %arg5[%c0_78, %c0_79] : memref<8x128xf32, #tpu.memory_space<vmem>>, vector<8x128xf32>
    tpu.vector_store %arg5[%c0_78, %c0_79], %91 {strides = array<i32>} : memref<8x128xf32, #tpu.memory_space<vmem>>, vector<8x128xf32>,
    return
  }
}

</mosaic_0001>

<bundles_post_ra>
// kernel: forward.1
= control target key start
LH: loop header
LB: loop body
LE: loop exit
PB: predicated region body
PF: predicated region fallthrough
CT: control target
= control target key end

     0   :  { %12 = vsyncpa [#allocation3], 0  ;;  %s2825_s0 = inlined_call_operand.vmem [shape: f32[16,128], index: 0, kind: input, shape index: {}]   ;;  %s2826_s1 = inlined_call_operand.vmem [shape: f32[8,128], index: 1, kind: input, shape index: {}]   ;;  %s2827_s2 = inlined_call_operand.hbm [shape: f32[11,128,128], index: 2, kind: input, shape index: {}]   ;;  %s2828_s3 = inlined_call_operand.hbm [shape: f32[160,128], index: 3, kind: input, shape index: {}]   ;;  %s2829_s4 = inlined_call_operand.vmem [shape: f32[16,128], index: 4, kind: output, shape index: {0}]   ;;  %s2830_s5 = inlined_call_operand.vmem [shape: f32[8,128], index: 5, kind: output, shape index: {1}]   ;;  %s2831_s6 = inlined_call_operand.vmem [shape: f32[8,128], index: 6, kind: output, shape index: {2}]  }
   0x1   :  { %13 = vsyncpa [#allocation5], 0  ;;  %s2519_s21 = smov [#allocation2]   ;;  %s2471_s25 = scalar_lea.hbm %s2827_s2, 22528 }
   0x2   :  { %s23_s22 = sshll.u32 %s2519_s21, 4  ;;  %p2472_p0 = scmp.ne.s32.totalorder %s2827_s2, %s2471_s25  ;;  %s24_s22 = int_to_ptr.vmem [resolvable:$true] %s23_s22 }
   0x3   :  { %p2475_p1 = scmp.lt.u32.totalorder %s2471_s25, %s2827_s2 }
   0x5   :  { %p2477_p2 = pnand %p2475_p1, %p2472_p0 }
   0x7   :  { %2480 = shalt.err (!%p2477_p2)
}
   0x8   :  { %s2481_s30 = scalar_lea.vmem %s24_s22, 22528  ;;  %p2486_p4 = scmp.lt.s32.totalorder %s24_s22, %s24_s22 }
   0x9   :  { %p2482_p3 = scmp.ne.s32.totalorder %s24_s22, %s2481_s30  ;;  %p2487_p5 = scmp.lt.s32.totalorder %s2481_s30, %s2481_s30 }
   0xb   :  { %p2488_p6 = por %p2487_p5, %p2486_p4 }
   0xd   :  { %p2489_p7 = pnand %p2488_p6, %p2482_p3 }
   0xf   :  { %2492 = shalt.err (!%p2489_p7)
}
  0x10   :  { %s2520_s7 = smov 128   ;;  %s2521_s8 = smov 8  }
  0x11   :  { %29 = dma.hbm_to_vmem [thread:$0]  %s2827_s2, 22528, %s24_s22, [#allocation3], %s2520_s7, %s2520_s7, %s2521_s8  }
  0x12   :  { %s2522_s11 = smov [#allocation4]   ;;  %s2493_s15 = scalar_lea.hbm %s2828_s3, 2560 }
  0x13   :  { %s35_s12 = sshll.u32 %s2522_s11, 4  ;;  %p2494_p8 = scmp.ne.s32.totalorder %s2828_s3, %s2493_s15  ;;  %s36_s12 = int_to_ptr.vmem [resolvable:$true] %s35_s12 }
  0x14   :  { %p2497_p9 = scmp.lt.u32.totalorder %s2493_s15, %s2828_s3 }
  0x16   :  { %p2499_p10 = pnand %p2497_p9, %p2494_p8 }
  0x18   :  { %2502 = shalt.err (!%p2499_p10)
}
  0x19   :  { %s2503_s20 = scalar_lea.vmem %s36_s12, 2560  ;;  %p2508_p12 = scmp.lt.s32.totalorder %s36_s12, %s36_s12 }
  0x1a   :  { %p2504_p11 = scmp.ne.s32.totalorder %s36_s12, %s2503_s20  ;;  %p2509_p13 = scmp.lt.s32.totalorder %s2503_s20, %s2503_s20 }
  0x1c   :  { %p2510_p0 = por %p2509_p13, %p2508_p12 }
  0x1e   :  { %p2511_p1 = pnand %p2510_p0, %p2504_p11 }
  0x20   :  { %2514 = shalt.err (!%p2511_p1)
}
  0x21   :  { %41 = dma.hbm_to_vmem [thread:$0]  %s2828_s3, 2560, %s36_s12, [#allocation5], %s2520_s7, %s2520_s7, %s2521_s8  }
  0x22   :  { %2515 = dma.done.wait [#allocation3], 22528  }
  0x23   :  { %2516 = vsyncadd [#allocation3], 4294944768 }
  0x24   :  { %2517 = dma.done.wait [#allocation5], 2560  }
  0x25   :  { %2518 = vsyncadd [#allocation5], 4294964736  ;;  %v50_v0 = vld [vmem:[#allocation2] sm:$0xff]  ;;  %v51_v1 = vld [vmem:[#allocation2 + $0x8] sm:$0xff]  ;;  %vm2524_vm0 = vmmov 0  }
  0x26   :  { %v52_v2 = vld [vmem:[#allocation2 + $0x10] sm:$0xff]  ;;  %v2080_v3 = vpack.c.bf16 %v51_v1, %v50_v0  ;;  %v53_v4 = vld [vmem:[#allocation2 + $0x18] sm:$0xff]  ;;  %v54_v6 = vld [vmem:[#allocation2 + $0x20] sm:$0xff] }
  0x27   :  { %v2084_v5 = vpack.c.bf16 %v53_v4, %v52_v2  ;;  %v55_v7 = vld [vmem:[#allocation2 + $0x28] sm:$0xff]  ;;  %v56_v9 = vld [vmem:[#allocation2 + $0x30] sm:$0xff]  ;;  %v57_v10 = vld [vmem:[#allocation2 + $0x38] sm:$0xff] }
  0x28   :  { %2081 = vmatprep.subr.bf16.mxu0 %v2080_v3  ;;  %v2088_v8 = vpack.c.bf16 %v55_v7, %v54_v6  ;;  %v48_v11 = vld [vmem:[%s2825_s0] sm:$0xff]  ;;  %v147_v13 = vld [vmem:[#allocation2 + $0x88] sm:$0xff]  ;;  %v148_v14 = vld [vmem:[#allocation2 + $0x90] sm:$0xff]  ;;  %v2092_v20 = vpack.c.bf16 %v57_v10, %v56_v9 }
  0x29   :  { %2083 = vmatpush3.bf16.msra.mxu0 %v2080_v3  ;;  %1622 = vmatprep.mubr.f32.mxu0 %v48_v11  ;;  %v146_v12 = vld [vmem:[#allocation2 + $0x80] sm:$0xff]  ;;  %v149_v16 = vld [vmem:[#allocation2 + $0x98] sm:$0xff]  ;;  %v151_v19 = vld [vmem:[#allocation2 + $0xa8] sm:$0xff] }
  0x2a   :  { %2085 = vmatprep.subr.bf16.mxu0 %v2084_v5  ;;  %v2112_v15 = vpack.c.bf16 %v147_v13, %v146_v12  ;;  %v2116_v17 = vpack.c.bf16 %v149_v16, %v148_v14  ;;  %v150_v18 = vld [vmem:[#allocation2 + $0xa0] sm:$0xff]  ;;  %v59_v22 = vld [vmem:[#allocation2 + $0x48] sm:$0xff]  ;;  %v152_v24 = vld [vmem:[#allocation2 + $0xb0] sm:$0xff] }
  0x2b   :  { %v58_v21 = vld [vmem:[#allocation2 + $0x40] sm:$0xff]  ;;  %v2120_v23 = vpack.c.bf16 %v151_v19, %v150_v18  ;;  %v153_v25 = vld [vmem:[#allocation2 + $0xb8] sm:$0xff]  ;;  %v60_v27 = vld [vmem:[#allocation2 + $0x50] sm:$0xff] }
  0x2c   :  { %2113 = vmatprep.subr.bf16.mxu1 %v2112_v15  ;;  %v2096_v26 = vpack.c.bf16 %v59_v22, %v58_v21  ;;  %v61_v28 = vld [vmem:[#allocation2 + $0x58] sm:$0xff]  ;;  %v2124_v29 = vpack.c.bf16 %v153_v25, %v152_v24  ;;  %v154_v30 = vld [vmem:[#allocation2 + $0xc0] sm:$0xff]  ;;  %v155_v31 = vld [vmem:[#allocation2 + $0xc8] sm:$0xff] }
  0x2d   :  { %2087 = vmatpush3.bf16.msra.mxu0 %v2084_v5  ;;  %2115 = vmatpush3.bf16.msra.mxu1 %v2112_v15  ;;  %v2100_v32 = vpack.c.bf16 %v61_v28, %v60_v27  ;;  %v62_v33 = vld [vmem:[#allocation2 + $0x60] sm:$0xff]  ;;  %v63_v34 = vld [vmem:[#allocation2 + $0x68] sm:$0xff]  ;;  %v2128_v35 = vpack.c.bf16 %v155_v31, %v154_v30  ;;  %v156_v36 = vld [vmem:[#allocation2 + $0xd0] sm:$0xff] }
  0x2e   :  { %2089 = vmatprep.subr.bf16.mxu0 %v2088_v8  ;;  %2117 = vmatprep.subr.bf16.mxu1 %v2116_v17  ;;  %v157_v37 = vld [vmem:[#allocation2 + $0xd8] sm:$0xff]  ;;  %v2104_v38 = vpack.c.bf16 %v63_v34, %v62_v33  ;;  %v64_v39 = vld [vmem:[#allocation2 + $0x70] sm:$0xff]  ;;  %v158_v42 = vld [vmem:[#allocation2 + $0xe0] sm:$0xff] }
  0x2f   :  { %v65_v40 = vld [vmem:[#allocation2 + $0x78] sm:$0xff]  ;;  %v2132_v41 = vpack.c.bf16 %v157_v37, %v156_v36  ;;  %v159_v43 = vld [vmem:[#allocation2 + $0xe8] sm:$0xff]  ;;  %v160_v47 = vld [vmem:[#allocation2 + $0xf0] sm:$0xff] }
  0x30   :  { %v2108_v44 = vpack.c.bf16 %v65_v40, %v64_v39  ;;  %v2136_v45 = vpack.c.bf16 %v159_v43, %v158_v42  ;;  %v49_v46 = vld [vmem:[%s2825_s0 + $0x8] sm:$0xff]  ;;  %v161_v48 = vld [vmem:[#allocation2 + $0xf8] sm:$0xff]  ;;  %v242_v50 = vld [vmem:[#allocation2 + $0x100] sm:$0xff] }
  0x31   :  { %2091 = vmatpush3.bf16.msra.mxu0 %v2088_v8  ;;  %2119 = vmatpush3.bf16.msra.mxu1 %v2116_v17  ;;  %v2140_v49 = vpack.c.bf16 %v161_v48, %v160_v47  ;;  %v243_v51 = vld [vmem:[#allocation2 + $0x108] sm:$0xff]  ;;  %v244_v52 = vld [vmem:[#allocation2 + $0x110] sm:$0xff]  ;;  %v245_v54 = vld [vmem:[#allocation2 + $0x118] sm:$0xff] }
  0x32   :  { %2093 = vmatprep.subr.bf16.mxu0 %v2092_v20  ;;  %2121 = vmatprep.subr.bf16.mxu1 %v2120_v23  ;;  %v2144_v53 = vpack.c.bf16 %v243_v51, %v242_v50  ;;  %v2148_v55 = vpack.c.bf16 %v245_v54, %v244_v52  ;;  %v246_v56 = vld [vmem:[#allocation2 + $0x120] sm:$0xff]  ;;  %v247_v57 = vld [vmem:[#allocation2 + $0x128] sm:$0xff]  ;;  %v248_v59 = vld [vmem:[#allocation2 + $0x130] sm:$0xff] }
  0x33   :  { %v2152_v58 = vpack.c.bf16 %v247_v57, %v246_v56  ;;  %v249_v60 = vld [vmem:[#allocation2 + $0x138] sm:$0xff]  ;;  %v250_v62 = vld [vmem:[#allocation2 + $0x140] sm:$0xff]  ;;  %v251_v63 = vld [vmem:[#allocation2 + $0x148] sm:$0xff] }
  0x34   :  { %v2156_v61 = vpack.c.bf16 %v249_v60, %v248_v59  ;;  %v2160_v0 = vpack.c.bf16 %v251_v63, %v250_v62  ;;  %v252_v1 = vld [vmem:[#allocation2 + $0x150] sm:$0xff]  ;;  %v253_v2 = vld [vmem:[#allocation2 + $0x158] sm:$0xff]  ;;  %v254_v4 = vld [vmem:[#allocation2 + $0x160] sm:$0xff] }
  0x35   :  { %2095 = vmatpush3.bf16.msra.mxu0 %v2092_v20  ;;  %2123 = vmatpush3.bf16.msra.mxu1 %v2120_v23  ;;  %v2164_v3 = vpack.c.bf16 %v253_v2, %v252_v1  ;;  %v255_v5 = vld [vmem:[#allocation2 + $0x168] sm:$0xff]  ;;  %v66_v8 = vld [vmem:[#allocation4] sm:$0xff]  ;;  %v256_v15 = vld [vmem:[#allocation2 + $0x170] sm:$0xff] }
  0x36   :  { %2097 = vmatprep.subr.bf16.mxu0 %v2096_v26  ;;  %2125 = vmatprep.subr.bf16.mxu1 %v2124_v29  ;;  %v2168_v6 = vpack.c.bf16 %v255_v5, %v254_v4  ;;  %v67_v7 = vld [vmem:[#allocation4 + $0x8] sm:$0xff]  ;;  %v257_v16 = vld [vmem:[#allocation2 + $0x178] sm:$0xff]  ;;  %v336_v18 = vld [vmem:[#allocation2 + $0x400] sm:$0xff] }
  0x37   :  { %v2172_v17 = vpack.c.bf16 %v257_v16, %v256_v15  ;;  %v337_v19 = vld [vmem:[#allocation2 + $0x408] sm:$0xff]  ;;  %v338_v20 = vld [vmem:[#allocation2 + $0x410] sm:$0xff]  ;;  %v339_v22 = vld [vmem:[#allocation2 + $0x418] sm:$0xff]  ;;  %v2523_v16 = vmov 0.0|0.0  }
  0x38   :  { %v2591_v21 = vpack.c.bf16 %v337_v19, %v336_v18  ;;  %v2593_v23 = vpack.c.bf16 %v339_v22, %v338_v20  ;;  %v340_v24 = vld [vmem:[#allocation2 + $0x420] sm:$0xff]  ;;  %v341_v25 = vld [vmem:[#allocation2 + $0x428] sm:$0xff]  ;;  %v342_v27 = vld [vmem:[#allocation2 + $0x430] sm:$0xff] }
  0x39   :  { %2099 = vmatpush3.bf16.msra.mxu0 %v2096_v26  ;;  %2127 = vmatpush3.bf16.msra.mxu1 %v2124_v29  ;;  %v2598_v26 = vpack.c.bf16 %v341_v25, %v340_v24  ;;  %v343_v28 = vld [vmem:[#allocation2 + $0x438] sm:$0xff]  ;;  %v344_v30 = vld [vmem:[#allocation2 + $0x440] sm:$0xff]  ;;  %v345_v31 = vld [vmem:[#allocation2 + $0x448] sm:$0xff] }
  0x3a   :  { %2101 = vmatprep.subr.bf16.mxu0 %v2100_v32  ;;  %2129 = vmatprep.subr.bf16.mxu1 %v2128_v35  ;;  %v2602_v29 = vpack.c.bf16 %v343_v28, %v342_v27  ;;  %v346_v33 = vld [vmem:[#allocation2 + $0x450] sm:$0xff]  ;;  %v347_v34 = vld [vmem:[#allocation2 + $0x458] sm:$0xff]  ;;  %v348_v36 = vld [vmem:[#allocation2 + $0x460] sm:$0xff] }
  0x3b   :  { %v349_v37 = vld [vmem:[#allocation2 + $0x468] sm:$0xff]  ;;  %v163_v39 = vld [vmem:[#allocation4 + $0x18] sm:$0xff]  ;;  %v162_v40 = vld [vmem:[#allocation4 + $0x10] sm:$0xff] }
  0x3c   :  { %v350_v47 = vld [vmem:[#allocation2 + $0x470] sm:$0xff]  ;;  %v351_v48 = vld [vmem:[#allocation2 + $0x478] sm:$0xff]  ;;  %v432_v50 = vld [vmem:[#allocation2 + $0x480] sm:$0xff] }
  0x3d   :  { %2103 = vmatpush3.bf16.msra.mxu0 %v2100_v32  ;;  %2131 = vmatpush3.bf16.msra.mxu1 %v2128_v35  ;;  %v2606_v32 = vpack.c.bf16 %v345_v31, %v344_v30  ;;  %v2610_v35 = vpack.c.bf16 %v347_v34, %v346_v33  ;;  %v433_v51 = vld [vmem:[#allocation2 + $0x488] sm:$0xff]  ;;  %v434_v52 = vld [vmem:[#allocation2 + $0x490] sm:$0xff]  ;;  %v435_v54 = vld [vmem:[#allocation2 + $0x498] sm:$0xff] }
  0x3e   :  { %2105 = vmatprep.subr.bf16.mxu0 %v2104_v38  ;;  %2133 = vmatprep.subr.bf16.mxu1 %v2132_v41  ;;  %v436_v56 = vld [vmem:[#allocation2 + $0x4a0] sm:$0xff]  ;;  %v437_v57 = vld [vmem:[#allocation2 + $0x4a8] sm:$0xff]  ;;  %v438_v59 = vld [vmem:[#allocation2 + $0x4b0] sm:$0xff] }
  0x3f   :  { %v439_v60 = vld [vmem:[#allocation2 + $0x4b8] sm:$0xff]  ;;  %v440_v62 = vld [vmem:[#allocation2 + $0x4c0] sm:$0xff]  ;;  %v441_v63 = vld [vmem:[#allocation2 + $0x4c8] sm:$0xff] }
  0x40   :  { %v442_v1 = vld [vmem:[#allocation2 + $0x4d0] sm:$0xff]  ;;  %v443_v2 = vld [vmem:[#allocation2 + $0x4d8] sm:$0xff]  ;;  %v444_v4 = vld [vmem:[#allocation2 + $0x4e0] sm:$0xff] }
  0x41   :  { %2107 = vmatpush3.bf16.msra.mxu0 %v2104_v38  ;;  %2135 = vmatpush3.bf16.msra.mxu1 %v2132_v41  ;;  %v2614_v38 = vpack.c.bf16 %v349_v37, %v348_v36  ;;  %v445_v5 = vld [vmem:[#allocation2 + $0x4e8] sm:$0xff]  ;;  %v530_v19 = vld [vmem:[#allocation2 + $0x510] sm:$0xff]  ;;  %v531_v22 = vld [vmem:[#allocation2 + $0x518] sm:$0xff] }
  0x42   :  { %2109 = vmatprep.subr.bf16.mxu0 %v2108_v44  ;;  %2137 = vmatprep.subr.bf16.mxu1 %v2136_v45  ;;  %v529_v18 = vld [vmem:[#allocation2 + $0x508] sm:$0xff]  ;;  %v2661_v24 = vpack.c.bf16 %v531_v22, %v530_v19  ;;  %v532_v25 = vld [vmem:[#allocation2 + $0x520] sm:$0xff]  ;;  %v534_v30 = vld [vmem:[#allocation2 + $0x530] sm:$0xff] }
  0x43   :  { %v533_v27 = vld [vmem:[#allocation2 + $0x528] sm:$0xff]  ;;  %v535_v31 = vld [vmem:[#allocation2 + $0x538] sm:$0xff]  ;;  %v536_v34 = vld [vmem:[#allocation2 + $0x540] sm:$0xff] }
  0x44   :  { %v2666_v28 = vpack.c.bf16 %v533_v27, %v532_v25  ;;  %v2670_v33 = vpack.c.bf16 %v535_v31, %v534_v30  ;;  %v537_v36 = vld [vmem:[#allocation2 + $0x548] sm:$0xff]  ;;  %v637_v19 = vld [vmem:[#allocation2 + $0x1e0] sm:$0xff]  ;;  %v639_v27 = vld [vmem:[#allocation2 + $0x1f0] sm:$0xff] }
  0x45   :  { %2111 = vmatpush3.bf16.msra.mxu0 %v2108_v44  ;;  %2139 = vmatpush3.bf16.msra.mxu1 %v2136_v45  ;;  %v2674_v37 = vpack.c.bf16 %v537_v36, %v536_v34  ;;  %v638_v22 = vld [vmem:[#allocation2 + $0x1e8] sm:$0xff]  ;;  %v640_v30 = vld [vmem:[#allocation2 + $0x1f8] sm:$0xff]  ;;  %v714_v34 = vld [vmem:[#allocation2 + $0x200] sm:$0xff] }
  0x46   :  { %2141 = vmatprep.subr.bf16.mxu1 %v2140_v49  ;;  %2145 = vmatprep.subr.bf16.mxu0 %v2144_v53  ;;  %v2291_v25 = vpack.c.bf16 %v638_v22, %v637_v19  ;;  %v2294_v31 = vpack.c.bf16 %v640_v30, %v639_v27  ;;  %v715_v36 = vld [vmem:[#allocation2 + $0x208] sm:$0xff] }
  0x48   :  { %1623 = vmatmul.mubr.f32.vlgmr.msra.gmra.mrb[0].mxu0 %v49_v46 }
  0x49   :  { %2143 = vmatpush3.bf16.msra.mxu1 %v2140_v49  ;;  %2147 = vmatpush3.bf16.msra.mxu0 %v2144_v53  ;;  %v2619_v49 = vpack.c.bf16 %v351_v48, %v350_v47  ;;  %v2623_v53 = vpack.c.bf16 %v433_v51, %v432_v50  ;;  %v625_v51 = vld [vmem:[#allocation2 + $0x180] sm:$0xff] }
  0x4a   :  { %2149 = vmatprep.subr.bf16.mxu0 %v2148_v55  ;;  %2177 = vmatprep.subr.bf16.mxu1 %v2591_v21 }
  0x4d   :  { %2151 = vmatpush3.bf16.msra.mxu0 %v2148_v55  ;;  %v2625_v55 = vpack.c.bf16 %v435_v54, %v434_v52  ;;  %v626_v52 = vld [vmem:[#allocation2 + $0x188] sm:$0xff] }
  0x4e   :  { %2153 = vmatprep.subr.bf16.mxu0 %v2152_v58 }
  0x51   :  { %2155 = vmatpush3.bf16.msra.mxu0 %v2152_v58  ;;  %v2630_v58 = vpack.c.bf16 %v437_v57, %v436_v56  ;;  %v2273_v57 = vpack.c.bf16 %v626_v52, %v625_v51  ;;  %v720_v51 = vld [vmem:[#allocation2 + $0x230] sm:$0xff]  ;;  %v721_v52 = vld [vmem:[#allocation2 + $0x238] sm:$0xff] }
  0x52   :  { %2157 = vmatprep.subr.bf16.mxu0 %v2156_v61 }
  0x55   :  { %2159 = vmatpush3.bf16.msra.mxu0 %v2156_v61  ;;  %v2634_v61 = vpack.c.bf16 %v439_v60, %v438_v59  ;;  %v627_v60 = vld [vmem:[#allocation2 + $0x190] sm:$0xff] }
  0x56   :  { %2161 = vmatprep.subr.bf16.mxu0 %v2160_v0 }
  0x59   :  { %2163 = vmatpush3.bf16.msra.mxu0 %v2160_v0  ;;  %v2638_v0 = vpack.c.bf16 %v441_v63, %v440_v62  ;;  %v628_v62 = vld [vmem:[#allocation2 + $0x198] sm:$0xff] }
  0x5a   :  { %2165 = vmatprep.subr.bf16.mxu0 %v2164_v3  ;;  %v2276_v63 = vpack.c.bf16 %v628_v62, %v627_v60  ;;  %v724_v60 = vld [vmem:[#allocation2 + $0x250] sm:$0xff]  ;;  %v725_v62 = vld [vmem:[#allocation2 + $0x258] sm:$0xff] }
  0x5d   :  { %2167 = vmatpush3.bf16.msra.mxu0 %v2164_v3  ;;  %v2642_v3 = vpack.c.bf16 %v443_v2, %v442_v1  ;;  %v2525_v1 = vmov 0.0   ;;  %v629_v2 = vld [vmem:[#allocation2 + $0x1a0] sm:$0xff] }
  0x5e   :  { %2169 = vmatprep.subr.bf16.mxu0 %v2168_v6 }
  0x61   :  { %2171 = vmatpush3.bf16.msra.mxu0 %v2168_v6  ;;  %v2646_v6 = vpack.c.bf16 %v445_v5, %v444_v4  ;;  %v630_v4 = vld [vmem:[#allocation2 + $0x1a8] sm:$0xff] }
  0x62   :  { %2173 = vmatprep.subr.bf16.mxu0 %v2172_v17  ;;  %v2279_v5 = vpack.c.bf16 %v630_v4, %v629_v2  ;;  %v726_v2 = vld [vmem:[#allocation2 + $0x260] sm:$0xff]  ;;  %v727_v4 = vld [vmem:[#allocation2 + $0x268] sm:$0xff] }
  0x65   :  { %2175 = vmatpush3.bf16.msra.mxu0 %v2172_v17  ;;  %v528_v17 = vld [vmem:[#allocation2 + $0x500] sm:$0xff] }
  0x66   :  { %2209 = vmatprep.subr.bf16.mxu0 %v2623_v53  ;;  %v2659_v20 = vpack.c.bf16 %v529_v18, %v528_v17  ;;  %v636_v17 = vld [vmem:[#allocation2 + $0x1d8] sm:$0xff] }
 0x11b   :  { %v1624_v9 = vpop.f32.mrb[0].mxu0 }
 0x11c   :  { %v140_v10 = vadd.f32 %v1624_v9, %v67_v7  ;;  %v134_v11 = vpop.f32.mrb[1].mxu0  ;;  %v258_v7 = vld [vmem:[#allocation4 + $0x20] sm:$0xff] }
 0x11d   :  { %v135_v12 = vadd.f32 %v134_v11, %v66_v8  ;;  %v259_v8 = vld [vmem:[#allocation4 + $0x28] sm:$0xff] }
 0x11e   :  { %v144_v14 = vmax.f32 %v140_v10, 0.0 }
 0x11f   :  { %v143_v13 = vmax.f32 %v135_v12, 0.0 }
 0x121   :  { %1657 = vmatprep.mubr.f32.mxu1 %v143_v13  ;;  %v446_v13 = vld [vmem:[#allocation2 + $0x4f0] sm:$0xff] }
 0x122   :  { %1658 = vmatmul.mubr.f32.vlgmr.msra.gmra.mrb[0].mxu1 %v144_v14  ;;  %v447_v14 = vld [vmem:[#allocation2 + $0x4f8] sm:$0xff] }
 0x123   :  { %2179 = vmatpush3.bf16.msra.mxu1 %v2591_v21  ;;  %v2654_v15 = vpack.c.bf16 %v447_v14, %v446_v13  ;;  %v635_v14 = vld [vmem:[#allocation2 + $0x1d0] sm:$0xff] }
 0x124   :  { %2181 = vmatprep.subr.bf16.mxu1 %v2593_v23  ;;  %v2288_v18 = vpack.c.bf16 %v636_v17, %v635_v14  ;;  %v449_v14 = vld [vmem:[#allocation4 + $0x88] sm:$0xff]  ;;  %v2721_v17 = vld [vmem:[#allocation4 + $0x80] sm:$0xff] }
 0x127   :  { %2183 = vmatpush3.bf16.msra.mxu1 %v2593_v23 }
 0x128   :  { %2185 = vmatprep.subr.bf16.mxu1 %v2598_v26 }
 0x12b   :  { %2187 = vmatpush3.bf16.msra.mxu1 %v2598_v26 }
 0x12c   :  { %2189 = vmatprep.subr.bf16.mxu1 %v2602_v29 }
 0x12f   :  { %2191 = vmatpush3.bf16.msra.mxu1 %v2602_v29 }
 0x130   :  { %2193 = vmatprep.subr.bf16.mxu1 %v2606_v32 }
 0x133   :  { %2195 = vmatpush3.bf16.msra.mxu1 %v2606_v32 }
 0x134   :  { %2197 = vmatprep.subr.bf16.mxu1 %v2610_v35 }
 0x137   :  { %2199 = vmatpush3.bf16.msra.mxu1 %v2610_v35 }
 0x138   :  { %2201 = vmatprep.subr.bf16.mxu1 %v2614_v38 }
 0x13b   :  { %2203 = vmatpush3.bf16.msra.mxu1 %v2614_v38 }
 0x13c   :  { %2205 = vmatprep.subr.bf16.mxu1 %v2619_v49 }
 0x13f   :  { %2207 = vmatpush3.bf16.msra.mxu1 %v2619_v49 }
 0x140   :  { %2241 = vmatprep.subr.bf16.mxu1 %v2659_v20 }
 0x1f5   :  { %v1659_v41 = vpop.f32.mrb[0].mxu1 }
 0x1f6   :  { %v236_v42 = vadd.f32 %v1659_v41, %v163_v39  ;;  %v230_v43 = vpop.f32.mrb[1].mxu1  ;;  %v538_v39 = vld [vmem:[#allocation2 + $0x550] sm:$0xff] }
 0x1f7   :  { %v231_v44 = vadd.f32 %v230_v43, %v162_v40  ;;  %v539_v40 = vld [vmem:[#allocation2 + $0x558] sm:$0xff]  ;;  %v541_v43 = vld [vmem:[#allocation2 + $0x568] sm:$0xff] }
 0x1f8   :  { %v240_v46 = vmax.f32 %v236_v42, 0.0  ;;  %v2678_v41 = vpack.c.bf16 %v539_v40, %v538_v39  ;;  %v540_v42 = vld [vmem:[#allocation2 + $0x560] sm:$0xff]  ;;  %v2321_v40 = vpack.c.bf16 %v715_v36, %v714_v34  ;;  %v733_v36 = vld [vmem:[#allocation2 + $0x290] sm:$0xff] }
 0x1f9   :  { %v239_v45 = vmax.f32 %v231_v44, 0.0  ;;  %v2682_v44 = vpack.c.bf16 %v541_v43, %v540_v42  ;;  %v623_v39 = vld [vmem:[%s2826_s1] sm:$0xff]  ;;  %v716_v42 = vld [vmem:[#allocation2 + $0x210] sm:$0xff]  ;;  %v717_v43 = vld [vmem:[#allocation2 + $0x218] sm:$0xff] }
 0x1fb   :  { %1692 = vmatprep.mubr.f32.mxu0 %v239_v45  ;;  %v353_v45 = vld [vmem:[#allocation4 + $0x78] sm:$0xff] }
 0x1fc   :  { %1693 = vmatmul.mubr.f32.vlgmr.msra.gmra.mrb[2].mxu0 %v240_v46  ;;  %v2687_v46 = vld [vmem:[#allocation4 + $0x70] sm:$0xff] }
 0x1fd   :  { %2211 = vmatpush3.bf16.msra.mxu0 %v2623_v53 }
 0x1fe   :  { %2213 = vmatprep.subr.bf16.mxu0 %v2625_v55 }
 0x201   :  { %2215 = vmatpush3.bf16.msra.mxu0 %v2625_v55 }
 0x202   :  { %2217 = vmatprep.subr.bf16.mxu0 %v2630_v58 }
 0x205   :  { %2219 = vmatpush3.bf16.msra.mxu0 %v2630_v58 }
 0x206   :  { %2221 = vmatprep.subr.bf16.mxu0 %v2634_v61 }
 0x209   :  { %2223 = vmatpush3.bf16.msra.mxu0 %v2634_v61 }
 0x20a   :  { %2225 = vmatprep.subr.bf16.mxu0 %v2638_v0 }
 0x20d   :  { %2227 = vmatpush3.bf16.msra.mxu0 %v2638_v0 }
 0x20e   :  { %2229 = vmatprep.subr.bf16.mxu0 %v2642_v3 }
 0x211   :  { %2231 = vmatpush3.bf16.msra.mxu0 %v2642_v3 }
 0x212   :  { %2233 = vmatprep.subr.bf16.mxu0 %v2646_v6 }
 0x215   :  { %2235 = vmatpush3.bf16.msra.mxu0 %v2646_v6 }
 0x216   :  { %2237 = vmatprep.subr.bf16.mxu0 %v2654_v15 }
 0x219   :  { %2239 = vmatpush3.bf16.msra.mxu0 %v2654_v15 }
 0x21a   :  { %2272 = vmatprep.subr.bf16.mxu0 %v2523_v16 }
 0x2cf   :  { %v1694_v9 = vpop.f32.mrb[2].mxu0 }
 0x2d0   :  { %v326_v10 = vpop.f32.mrb[3].mxu0  ;;  %v332_v12 = vadd.f32 %v1694_v9, %v259_v8  ;;  %v632_v8 = vld [vmem:[#allocation2 + $0x1b8] sm:$0xff] }
 0x2d1   :  { %v2651_v11 = vadd.f32 %v326_v10, %v258_v7  ;;  %v631_v7 = vld [vmem:[#allocation2 + $0x1b0] sm:$0xff]  ;;  %v633_v10 = vld [vmem:[#allocation2 + $0x1c0] sm:$0xff] }
 0x2d2   :  { %v2282_v9 = vpack.c.bf16 %v632_v8, %v631_v7  ;;  %v728_v7 = vld [vmem:[#allocation2 + $0x270] sm:$0xff]  ;;  %v729_v8 = vld [vmem:[#allocation2 + $0x278] sm:$0xff] }
 0x2d3   :  { %1727 = vmatprep.mubr.f32.mxu1 %v2651_v11 }
 0x2d4   :  { %1728 = vmatmul.mubr.f32.vlgmr.msra.gmra.mrb[2].mxu1 %v332_v12  ;;  %v634_v12 = vld [vmem:[#allocation2 + $0x1c8] sm:$0xff] }
 0x2d5   :  { %2243 = vmatpush3.bf16.msra.mxu1 %v2659_v20  ;;  %v2285_v13 = vpack.c.bf16 %v634_v12, %v633_v10  ;;  %v542_v10 = vld [vmem:[#allocation2 + $0x570] sm:$0xff]  ;;  %v543_v12 = vld [vmem:[#allocation2 + $0x578] sm:$0xff] }
 0x2d6   :  { %2245 = vmatprep.subr.bf16.mxu1 %v2661_v24 }
 0x2d9   :  { %2247 = vmatpush3.bf16.msra.mxu1 %v2661_v24 }
 0x2da   :  { %2249 = vmatprep.subr.bf16.mxu1 %v2666_v28 }
 0x2dd   :  { %2251 = vmatpush3.bf16.msra.mxu1 %v2666_v28 }
 0x2de   :  { %2253 = vmatprep.subr.bf16.mxu1 %v2670_v33 }
 0x2e1   :  { %2255 = vmatpush3.bf16.msra.mxu1 %v2670_v33 }
 0x2e2   :  { %2257 = vmatprep.subr.bf16.mxu1 %v2674_v37 }
 0x2e5   :  { %2259 = vmatpush3.bf16.msra.mxu1 %v2674_v37 }
 0x2e6   :  { %2261 = vmatprep.subr.bf16.mxu1 %v2678_v41 }
 0x2e9   :  { %2263 = vmatpush3.bf16.msra.mxu1 %v2678_v41 }
 0x2ea   :  { %2265 = vmatprep.subr.bf16.mxu1 %v2682_v44 }
 0x2ed   :  { %2267 = vmatpush3.bf16.msra.mxu1 %v2682_v44 }
 0x3a7   :  { %v1729_v47 = vpop.f32.mrb[2].mxu1 }
 0x3a8   :  { %v426_v48 = vadd.f32 %v1729_v47, %v353_v45  ;;  %v420_v50 = vpop.f32.mrb[3].mxu1  ;;  %v2324_v45 = vpack.c.bf16 %v717_v43, %v716_v42  ;;  %v718_v47 = vld [vmem:[#allocation2 + $0x220] sm:$0xff]  ;;  %v736_v43 = vld [vmem:[#allocation2 + $0x2a8] sm:$0xff] }
 0x3a9   :  { %v421_v54 = vadd.f32 %v420_v50, %v2687_v46  ;;  %v735_v42 = vld [vmem:[#allocation2 + $0x2a0] sm:$0xff] }
 0x3aa   :  { %v430_v59 = vmax.f32 %v426_v48, 0.0  ;;  %v719_v48 = vld [vmem:[#allocation2 + $0x228] sm:$0xff] }
 0x3ab   :  { %v429_v56 = vmax.f32 %v421_v54, 0.0  ;;  %v2327_v50 = vpack.c.bf16 %v719_v48, %v718_v47  ;;  %v2330_v54 = vpack.c.bf16 %v721_v52, %v720_v51  ;;  %v737_v47 = vld [vmem:[#allocation2 + $0x2b0] sm:$0xff]  ;;  %v738_v48 = vld [vmem:[#allocation2 + $0x2b8] sm:$0xff]  ;;  %v739_v51 = vld [vmem:[#allocation2 + $0x2c0] sm:$0xff] }
 0x3ac   :  { %v740_v52 = vld [vmem:[#allocation2 + $0x2c8] sm:$0xff] }
 0x3ad   :  { %1762 = vmatprep.mubr.f32.mxu0 %v429_v56  ;;  %v722_v56 = vld [vmem:[#allocation2 + $0x240] sm:$0xff] }
 0x3ae   :  { %1763 = vmatmul.mubr.f32.vlgmr.msra.gmra.mrb[4].mxu0 %v430_v59 }
 0x3af   :  { %2274 = vmatpush3.bf16.msra.mxu0 %v2273_v57  ;;  %1832 = vmatprep.mubr.msk.f32.mxu0 %vm2524_vm0, %v2525_v1  ;;  %v723_v57 = vld [vmem:[#allocation2 + $0x248] sm:$0xff] }
 0x3b0   :  { %2275 = vmatprep.subr.bf16.mxu0 %v2523_v16  ;;  %v2333_v59 = vpack.c.bf16 %v723_v57, %v722_v56  ;;  %v741_v56 = vld [vmem:[#allocation2 + $0x2d0] sm:$0xff]  ;;  %v742_v57 = vld [vmem:[#allocation2 + $0x2d8] sm:$0xff] }
 0x3b3   :  { %2277 = vmatpush3.bf16.msra.mxu0 %v2276_v63  ;;  %v2336_v63 = vpack.c.bf16 %v725_v62, %v724_v60  ;;  %v743_v60 = vld [vmem:[#allocation2 + $0x2e0] sm:$0xff]  ;;  %v744_v62 = vld [vmem:[#allocation2 + $0x2e8] sm:$0xff] }
 0x3b4   :  { %2278 = vmatprep.subr.bf16.mxu0 %v2523_v16 }
 0x3b7   :  { %2280 = vmatpush3.bf16.msra.mxu0 %v2279_v5  ;;  %v2339_v5 = vpack.c.bf16 %v727_v4, %v726_v2  ;;  %v745_v2 = vld [vmem:[#allocation2 + $0x2f0] sm:$0xff]  ;;  %v746_v4 = vld [vmem:[#allocation2 + $0x2f8] sm:$0xff] }
 0x3b8   :  { %2281 = vmatprep.subr.bf16.mxu0 %v2523_v16 }
 0x3bb   :  { %2283 = vmatpush3.bf16.msra.mxu0 %v2282_v9  ;;  %v2342_v9 = vpack.c.bf16 %v729_v8, %v728_v7  ;;  %v2318_v8 = vpack.c.bf16 %v746_v4, %v745_v2  ;;  %v982_v2 = vld [vmem:[#allocation2 + $0x390] sm:$0xff] }
 0x3bc   :  { %2284 = vmatprep.subr.bf16.mxu0 %v2523_v16 }
 0x3bf   :  { %2286 = vmatpush3.bf16.msra.mxu0 %v2285_v13  ;;  %v2716_v13 = vpack.c.bf16 %v543_v12, %v542_v10 }
 0x3c0   :  { %2287 = vmatprep.subr.bf16.mxu0 %v2523_v16 }
 0x3c1   :  { %2269 = vmatprep.subr.bf16.mxu1 %v2716_v13 }
 0x3c2   :  { %2271 = vmatpush3.bf16.msra.mxu1 %v2716_v13 }
 0x3c3   :  { %2289 = vmatpush3.bf16.msra.mxu0 %v2288_v18  ;;  %2296 = vmatprep.subr.bf16.mxu1 %v2523_v16 }
 0x3c4   :  { %2290 = vmatprep.subr.bf16.mxu0 %v2523_v16 }
 0x3c7   :  { %2292 = vmatpush3.bf16.msra.mxu0 %v2291_v25  ;;  %v732_v25 = vld [vmem:[#allocation2 + $0x288] sm:$0xff] }
 0x3c8   :  { %2293 = vmatprep.subr.bf16.mxu0 %v2523_v16 }
 0x3cb   :  { %2295 = vmatpush3.bf16.msra.mxu0 %v2294_v31 }
 0x3cc   :  { %2320 = vmatprep.subr.bf16.mxu0 %v2523_v16 }
 0x3ce   :  { %1833 = vmatmul.mubr.f32.vlgmr.msra.gmra.mrb[6].mxu0 %v623_v39  ;;  %v734_v39 = vld [vmem:[#allocation2 + $0x298] sm:$0xff] }
 0x3cf   :  { %2322 = vmatpush3.bf16.msra.mxu0 %v2321_v40  ;;  %1902 = vmatprep.mubr.msk.f32.mxu0 %vm2524_vm0, %v2525_v1  ;;  %v2300_v40 = vpack.c.bf16 %v734_v39, %v733_v36  ;;  %v897_v39 = vld [vmem:[#allocation2 + $0x330] sm:$0xff] }
 0x3d0   :  { %2323 = vmatprep.subr.bf16.mxu0 %v2523_v16 }
 0x3d3   :  { %2325 = vmatpush3.bf16.msra.mxu0 %v2324_v45  ;;  %v2303_v45 = vpack.c.bf16 %v736_v43, %v735_v42  ;;  %v899_v43 = vld [vmem:[#allocation2 + $0x340] sm:$0xff] }
 0x3d4   :  { %2326 = vmatprep.subr.bf16.mxu0 %v2523_v16 }
 0x3d7   :  { %2328 = vmatpush3.bf16.msra.mxu0 %v2327_v50  ;;  %v2306_v50 = vpack.c.bf16 %v738_v48, %v737_v47  ;;  %v901_v48 = vld [vmem:[#allocation2 + $0x350] sm:$0xff] }
 0x3d8   :  { %2329 = vmatprep.subr.bf16.mxu0 %v2523_v16 }
 0x3db   :  { %2331 = vmatpush3.bf16.msra.mxu0 %v2330_v54  ;;  %v2309_v54 = vpack.c.bf16 %v740_v52, %v739_v51  ;;  %v903_v52 = vld [vmem:[#allocation2 + $0x360] sm:$0xff] }
 0x3dc   :  { %2332 = vmatprep.subr.bf16.mxu0 %v2523_v16 }
 0x3df   :  { %2334 = vmatpush3.bf16.msra.mxu0 %v2333_v59  ;;  %v2312_v59 = vpack.c.bf16 %v742_v57, %v741_v56  ;;  %v905_v57 = vld [vmem:[#allocation2 + $0x370] sm:$0xff] }
 0x3e0   :  { %2335 = vmatprep.subr.bf16.mxu0 %v2523_v16 }
 0x3e3   :  { %2337 = vmatpush3.bf16.msra.mxu0 %v2336_v63  ;;  %v2315_v63 = vpack.c.bf16 %v744_v62, %v743_v60  ;;  %v980_v62 = vld [vmem:[#allocation2 + $0x380] sm:$0xff] }
 0x3e4   :  { %2338 = vmatprep.subr.bf16.mxu0 %v2523_v16 }
 0x3e7   :  { %2340 = vmatpush3.bf16.msra.mxu0 %v2339_v5  ;;  %v641_v5 = vld [vmem:[#allocation4 + $0x30] sm:$0xff] }
 0x3e8   :  { %2341 = vmatprep.subr.bf16.mxu0 %v2523_v16 }
 0x3eb   :  { %2343 = vmatpush3.bf16.msra.mxu0 %v2342_v9 }
 0x3ec   :  { %2368 = vmatprep.subr.bf16.mxu0 %v2523_v16 }
 0x3ee   :  { %1903 = vmatmul.mubr.f32.vlgmr.msra.gmra.mrb[8].mxu0 %v2651_v11  ;;  %v731_v11 = vld [vmem:[#allocation2 + $0x280] sm:$0xff] }
 0x3ef   :  { %1972 = vmatprep.mubr.msk.f32.mxu0 %vm2524_vm0, %v2525_v1  ;;  %v2297_v31 = vpack.c.bf16 %v732_v25, %v731_v11  ;;  %v893_v11 = vld [vmem:[#allocation2 + $0x310] sm:$0xff] }
 0x481   :  { %v1764_v18 = vpop.f32.mrb[4].mxu0 }
 0x482   :  { %v522_v19 = vadd.f32 %v1764_v18, %v449_v14  ;;  %v516_v22 = vpop.f32.mrb[5].mxu0 }
 0x483   :  { %v517_v27 = vadd.f32 %v516_v22, %v2721_v17  ;;  %v892_v22 = vld [vmem:[#allocation2 + $0x308] sm:$0xff] }
 0x484   :  { %v526_v34 = vmax.f32 %v522_v19, 0.0  ;;  %v891_v19 = vld [vmem:[#allocation2 + $0x300] sm:$0xff] }
 0x485   :  { %v525_v30 = vmax.f32 %v517_v27, 0.0  ;;  %v2345_v25 = vpack.c.bf16 %v892_v22, %v891_v19  ;;  %v894_v27 = vld [vmem:[#allocation2 + $0x318] sm:$0xff]  ;;  %v988_v22 = vld [vmem:[#allocation2 + $0x3c0] sm:$0xff] }
 0x487   :  { %1797 = vmatprep.mubr.f32.mxu1 %v525_v30  ;;  %v2348_v30 = vpack.c.bf16 %v894_v27, %v893_v11  ;;  %v989_v11 = vld [vmem:[#allocation2 + $0x3c8] sm:$0xff]  ;;  %v990_v27 = vld [vmem:[#allocation2 + $0x3d0] sm:$0xff] }
 0x488   :  { %1798 = vmatmul.mubr.f32.vlgmr.msra.gmra.mrb[4].mxu1 %v526_v34  ;;  %v896_v34 = vld [vmem:[#allocation2 + $0x328] sm:$0xff] }
 0x489   :  { %2298 = vmatpush3.bf16.msra.mxu1 %v2297_v31  ;;  %1867 = vmatprep.mubr.msk.f32.mxu1 %vm2524_vm0, %v2525_v1  ;;  %v895_v31 = vld [vmem:[#allocation2 + $0x320] sm:$0xff] }
 0x48a   :  { %2299 = vmatprep.subr.bf16.mxu1 %v2523_v16  ;;  %v2351_v36 = vpack.c.bf16 %v896_v34, %v895_v31  ;;  %v992_v34 = vld [vmem:[#allocation2 + $0x3e0] sm:$0xff] }
 0x48d   :  { %2301 = vmatpush3.bf16.msra.mxu1 %v2300_v40  ;;  %v898_v40 = vld [vmem:[#allocation2 + $0x338] sm:$0xff] }
 0x48e   :  { %2302 = vmatprep.subr.bf16.mxu1 %v2523_v16  ;;  %v2354_v42 = vpack.c.bf16 %v898_v40, %v897_v39  ;;  %v545_v40 = vld [vmem:[#allocation4 + $0x98] sm:$0xff] }
 0x491   :  { %2304 = vmatpush3.bf16.msra.mxu1 %v2303_v45  ;;  %v900_v45 = vld [vmem:[#allocation2 + $0x348] sm:$0xff] }
 0x492   :  { %2305 = vmatprep.subr.bf16.mxu1 %v2523_v16  ;;  %v2357_v47 = vpack.c.bf16 %v900_v45, %v899_v43 }
 0x495   :  { %2307 = vmatpush3.bf16.msra.mxu1 %v2306_v50  ;;  %v902_v50 = vld [vmem:[#allocation2 + $0x358] sm:$0xff] }
 0x496   :  { %2308 = vmatprep.subr.bf16.mxu1 %v2523_v16  ;;  %v2360_v51 = vpack.c.bf16 %v902_v50, %v901_v48 }
 0x499   :  { %2310 = vmatpush3.bf16.msra.mxu1 %v2309_v54  ;;  %v904_v54 = vld [vmem:[#allocation2 + $0x368] sm:$0xff] }
 0x49a   :  { %2311 = vmatprep.subr.bf16.mxu1 %v2523_v16  ;;  %v2363_v56 = vpack.c.bf16 %v904_v54, %v903_v52 }
 0x49d   :  { %2313 = vmatpush3.bf16.msra.mxu1 %v2312_v59  ;;  %v906_v59 = vld [vmem:[#allocation2 + $0x378] sm:$0xff] }
 0x49e   :  { %2314 = vmatprep.subr.bf16.mxu1 %v2523_v16  ;;  %v2366_v60 = vpack.c.bf16 %v906_v59, %v905_v57 }
 0x4a1   :  { %2316 = vmatpush3.bf16.msra.mxu1 %v2315_v63  ;;  %v708_v7 = vpop.f32.mrb[6].mxu0  ;;  %v981_v63 = vld [vmem:[#allocation2 + $0x388] sm:$0xff] }
 0x4a2   :  { %v709_v9 = vadd.f32 %v708_v7, %v641_v5  ;;  %v1834_v10 = vpop.f32.mrb[7].mxu0  ;;  %2317 = vmatprep.subr.bf16.mxu1 %v2523_v16  ;;  %v2369_v4 = vpack.c.bf16 %v981_v63, %v980_v62  ;;  %v983_v5 = vld [vmem:[#allocation2 + $0x398] sm:$0xff] }
 0x4a3   :  { %v2372_v7 = vpack.c.bf16 %v983_v5, %v982_v2 }
 0x4a4   :  { %v712_v12 = vmax.f32 %v709_v9, 0.0  ;;  %2370 = vmatpush3.bf16.msra.mxu0 %v2369_v4  ;;  %v985_v9 = vld [vmem:[#allocation2 + $0x3a8] sm:$0xff] }
 0x4a5   :  { %2319 = vmatpush3.bf16.msra.mxu1 %v2318_v8  ;;  %2371 = vmatprep.subr.bf16.mxu0 %v2523_v16  ;;  %v984_v8 = vld [vmem:[#allocation2 + $0x3a0] sm:$0xff] }
 0x4a6   :  { %2344 = vmatprep.subr.bf16.mxu1 %v2523_v16  ;;  %v2375_v10 = vpack.c.bf16 %v985_v9, %v984_v8 }
 0x4a8   :  { %1868 = vmatmul.mubr.f32.vlgmr.msra.gmra.mrb[6].mxu1 %v712_v12  ;;  %2373 = vmatpush3.bf16.msra.mxu0 %v2372_v7  ;;  %v986_v12 = vld [vmem:[#allocation2 + $0x3b0] sm:$0xff] }
 0x4a9   :  { %1937 = vmatprep.mubr.msk.f32.mxu1 %vm2524_vm0, %v2525_v1  ;;  %2346 = vmatpush3.bf16.msra.mxu1 %v2345_v25  ;;  %v2381_v25 = vpack.c.bf16 %v989_v11, %v988_v22 }
 0x4aa   :  { %2347 = vmatprep.subr.bf16.mxu1 %v2523_v16  ;;  %2374 = vmatprep.subr.bf16.mxu0 %v2523_v16 }
 0x4ac   :  { %2376 = vmatpush3.bf16.msra.mxu0 %v2375_v10 }
 0x4ad   :  { %2349 = vmatpush3.bf16.msra.mxu1 %v2348_v30  ;;  %2377 = vmatprep.subr.bf16.mxu0 %v2523_v16  ;;  %v991_v30 = vld [vmem:[#allocation2 + $0x3d8] sm:$0xff] }
 0x4ae   :  { %2350 = vmatprep.subr.bf16.mxu1 %v2523_v16  ;;  %v2384_v31 = vpack.c.bf16 %v991_v30, %v990_v27 }
 0x4b1   :  { %2352 = vmatpush3.bf16.msra.mxu1 %v2351_v36  ;;  %v993_v36 = vld [vmem:[#allocation2 + $0x3e8] sm:$0xff] }
 0x4b2   :  { %2353 = vmatprep.subr.bf16.mxu1 %v2523_v16  ;;  %v2387_v39 = vpack.c.bf16 %v993_v36, %v992_v34 }
 0x4b5   :  { %2355 = vmatpush3.bf16.msra.mxu1 %v2354_v42  ;;  %v2753_v42 = vld [vmem:[#allocation4 + $0x90] sm:$0xff] }
 0x4b6   :  { %2356 = vmatprep.subr.bf16.mxu1 %v2523_v16 }
 0x4b9   :  { %2358 = vmatpush3.bf16.msra.mxu1 %v2357_v47 }
 0x4ba   :  { %2359 = vmatprep.subr.bf16.mxu1 %v2523_v16 }
 0x4bd   :  { %2361 = vmatpush3.bf16.msra.mxu1 %v2360_v51  ;;  %v887_v51 = vld [vmem:[#allocation4 + $0x40] sm:$0xff] }
 0x4be   :  { %2362 = vmatprep.subr.bf16.mxu1 %v2523_v16 }
 0x4c1   :  { %v2736_v14 = vpop.f32.mrb[8].mxu0  ;;  %2364 = vmatpush3.bf16.msra.mxu1 %v2363_v56 }
 0x4c2   :  { %v1904_v18 = vpop.f32.mrb[9].mxu0  ;;  %2365 = vmatprep.subr.bf16.mxu1 %v2523_v16 }
 0x4c3   :  { %v987_v18 = vld [vmem:[#allocation2 + $0x3b8] sm:$0xff] }
 0x4c4   :  { %v2378_v19 = vpack.c.bf16 %v987_v18, %v986_v12 }
 0x4c5   :  { %2367 = vmatpush3.bf16.msra.mxu1 %v2366_v60 }
 0x4c6   :  { %2392 = vmatprep.subr.bf16.mxu1 %v2523_v16  ;;  %2379 = vmatpush3.bf16.msra.mxu0 %v2378_v19 }
 0x4c7   :  { %2380 = vmatprep.subr.bf16.mxu0 %v2523_v16 }
 0x4ca   :  { %2382 = vmatpush3.bf16.msra.mxu0 %v2381_v25 }
 0x4cb   :  { %2383 = vmatprep.subr.bf16.mxu0 %v2523_v16 }
 0x4ce   :  { %2385 = vmatpush3.bf16.msra.mxu0 %v2384_v31 }
 0x4cf   :  { %2386 = vmatprep.subr.bf16.mxu0 %v2523_v16 }
 0x4d2   :  { %2388 = vmatpush3.bf16.msra.mxu0 %v2387_v39 }
 0x4d3   :  { %2389 = vmatprep.subr.bf16.mxu0 %v2523_v16 }
 0x55b   :  { %v1799_v43 = vpop.f32.mrb[4].mxu1 }
 0x55c   :  { %v618_v45 = vadd.f32 %v1799_v43, %v545_v40  ;;  %v612_v47 = vpop.f32.mrb[5].mxu1 }
 0x55d   :  { %v613_v48 = vadd.f32 %v612_v47, %v2753_v42 }
 0x55e   :  { %622 = vst [vmem:[%s2829_s4 + $0x8] sm:$0xff] %v618_v45 }
 0x55f   :  { %621 = vst [vmem:[%s2829_s4] sm:$0xff] %v613_v48 }
 0x57b   :  { %v813_v50 = vpop.f32.mrb[6].mxu1 }
 0x57c   :  { %v884_v52 = vadd.f32 %v2736_v14, %v813_v50  ;;  %v1869_v54 = vpop.f32.mrb[7].mxu1 }
 0x57e   :  { %v888_v56 = vadd.f32 %v887_v51, %v884_v52 }
 0x580   :  { %v889_v57 = vmax.f32 %v888_v56, 0.0 }
 0x582   :  { %1938 = vmatmul.mubr.f32.vlgmr.msra.gmra.mrb[8].mxu1 %v889_v57 }
 0x583   :  { %2394 = vmatpush3.bf16.msra.mxu1 %v2591_v21  ;;  %2007 = vmatprep.mubr.msk.f32.mxu1 %vm2524_vm0, %v2525_v1  ;;  %v994_v21 = vld [vmem:[#allocation2 + $0x3f0] sm:$0xff] }
 0x584   :  { %2395 = vmatprep.subr.bf16.mxu1 %v2523_v16 }
 0x587   :  { %2397 = vmatpush3.bf16.msra.mxu1 %v2593_v23  ;;  %v995_v23 = vld [vmem:[#allocation2 + $0x3f8] sm:$0xff] }
 0x588   :  { %2398 = vmatprep.subr.bf16.mxu1 %v2523_v16 }
 0x58b   :  { %2400 = vmatpush3.bf16.msra.mxu1 %v2598_v26  ;;  %v2390_v26 = vpack.c.bf16 %v995_v23, %v994_v21 }
 0x58c   :  { %2401 = vmatprep.subr.bf16.mxu1 %v2523_v16 }
 0x58d   :  { %2391 = vmatpush3.bf16.msra.mxu0 %v2390_v26 }
 0x58e   :  { %2416 = vmatprep.subr.bf16.mxu0 %v2523_v16 }
 0x58f   :  { %2403 = vmatpush3.bf16.msra.mxu1 %v2602_v29  ;;  %v907_v29 = vld [vmem:[#allocation4 + $0x50] sm:$0xff] }
 0x590   :  { %2404 = vmatprep.subr.bf16.mxu1 %v2523_v16 }
 0x593   :  { %2406 = vmatpush3.bf16.msra.mxu1 %v2606_v32 }
 0x594   :  { %2407 = vmatprep.subr.bf16.mxu1 %v2523_v16 }
 0x597   :  { %2409 = vmatpush3.bf16.msra.mxu1 %v2610_v35 }
 0x598   :  { %2410 = vmatprep.subr.bf16.mxu1 %v2523_v16 }
 0x59b   :  { %2412 = vmatpush3.bf16.msra.mxu1 %v2614_v38  ;;  %v996_v38 = vld [vmem:[#allocation4 + $0x60] sm:$0xff] }
 0x59c   :  { %2413 = vmatprep.subr.bf16.mxu1 %v2523_v16 }
 0x59f   :  { %2415 = vmatpush3.bf16.msra.mxu1 %v2619_v49 }
 0x5a0   :  { %2440 = vmatprep.subr.bf16.mxu1 %v2523_v16 }
 0x655   :  { %v974_v32 = vpop.f32.mrb[8].mxu1 }
 0x656   :  { %v975_v14 = vadd.f32 %v974_v32, %v907_v29  ;;  %v1939_v35 = vpop.f32.mrb[9].mxu1 }
 0x658   :  { %v978_v59 = vmax.f32 %v975_v14, 0.0 }
 0x65a   :  { %1973 = vmatmul.mubr.f32.vlgmr.msra.gmra.mrb[10].mxu0 %v978_v59 }
 0x65b   :  { %2418 = vmatpush3.bf16.msra.mxu0 %v2623_v53  ;;  %2042 = vmatprep.mubr.msk.f32.mxu0 %vm2524_vm0, %v2525_v1 }
 0x65c   :  { %2419 = vmatprep.subr.bf16.mxu0 %v2523_v16 }
 0x65f   :  { %2421 = vmatpush3.bf16.msra.mxu0 %v2625_v55 }
 0x660   :  { %2422 = vmatprep.subr.bf16.mxu0 %v2523_v16 }
 0x663   :  { %2424 = vmatpush3.bf16.msra.mxu0 %v2630_v58 }
 0x664   :  { %2425 = vmatprep.subr.bf16.mxu0 %v2523_v16 }
 0x667   :  { %2427 = vmatpush3.bf16.msra.mxu0 %v2634_v61 }
 0x668   :  { %2428 = vmatprep.subr.bf16.mxu0 %v2523_v16 }
 0x66b   :  { %2430 = vmatpush3.bf16.msra.mxu0 %v2638_v0 }
 0x66c   :  { %2431 = vmatprep.subr.bf16.mxu0 %v2523_v16 }
 0x66f   :  { %2433 = vmatpush3.bf16.msra.mxu0 %v2642_v3 }
 0x670   :  { %2434 = vmatprep.subr.bf16.mxu0 %v2523_v16 }
 0x673   :  { %2436 = vmatpush3.bf16.msra.mxu0 %v2646_v6 }
 0x674   :  { %2437 = vmatprep.subr.bf16.mxu0 %v2523_v16 }
 0x677   :  { %2439 = vmatpush3.bf16.msra.mxu0 %v2654_v15 }
 0x72d   :  { %v1063_v49 = vpop.f32.mrb[10].mxu0 }
 0x72e   :  { %v1064_v53 = vadd.f32 %v1063_v49, %v996_v38  ;;  %v1974_v55 = vpop.f32.mrb[11].mxu0 }
 0x730   :  { %1067 = vst [vmem:[%s2831_s6] sm:$0xff] %v1064_v53  ;;  %2008 = vmatmul.mubr.f32.vlgmr.msra.gmra.mrb[10].mxu1 %v1064_v53 }
 0x731   :  { %2442 = vmatpush3.bf16.msra.mxu1 %v2659_v20  ;;  %2077 = vmatprep.mubr.msk.f32.mxu1 %vm2524_vm0, %v2525_v1 }
 0x732   :  { %2443 = vmatprep.subr.bf16.mxu1 %v2523_v16 }
 0x735   :  { %2445 = vmatpush3.bf16.msra.mxu1 %v2661_v24 }
 0x736   :  { %2446 = vmatprep.subr.bf16.mxu1 %v2523_v16 }
 0x739   :  { %2448 = vmatpush3.bf16.msra.mxu1 %v2666_v28 }
 0x73a   :  { %2449 = vmatprep.subr.bf16.mxu1 %v2523_v16 }
 0x73d   :  { %2451 = vmatpush3.bf16.msra.mxu1 %v2670_v33 }
 0x73e   :  { %2452 = vmatprep.subr.bf16.mxu1 %v2523_v16 }
 0x741   :  { %2454 = vmatpush3.bf16.msra.mxu1 %v2674_v37 }
 0x742   :  { %2455 = vmatprep.subr.bf16.mxu1 %v2523_v16 }
 0x745   :  { %2457 = vmatpush3.bf16.msra.mxu1 %v2678_v41 }
 0x746   :  { %2458 = vmatprep.subr.bf16.mxu1 %v2523_v16 }
 0x749   :  { %2460 = vmatpush3.bf16.msra.mxu1 %v2682_v44 }
 0x74a   :  { %2461 = vmatprep.subr.bf16.mxu1 %v2523_v16 }
 0x74d   :  { %2463 = vmatpush3.bf16.msra.mxu1 %v2716_v13 }
 0x803   :  { %v1151_v58 = vpop.f32.mrb[10].mxu1 }
 0x804   :  { %v1152_v61 = vadd.f32 %v1151_v58, %v2687_v46  ;;  %v2009_v0 = vpop.f32.mrb[11].mxu1 }
 0x806   :  { %v1155_v3 = vmax.f32 %v1152_v61, 0.0 }
 0x808   :  { %2043 = vmatmul.mubr.f32.vlgmr.msra.gmra.mrb[12].mxu0 %v1155_v3 }
 0x8db   :  { %v1239_v6 = vpop.f32.mrb[12].mxu0 }
 0x8dc   :  { %v1240_v15 = vadd.f32 %v1239_v6, %v2721_v17  ;;  %v2044_v20 = vpop.f32.mrb[13].mxu0 }
 0x8de   :  { %v1243_v24 = vmax.f32 %v1240_v15, 0.0 }
 0x8e0   :  { %2078 = vmatmul.mubr.f32.vlgmr.msra.gmra.mrb[12].mxu1 %v1243_v24 }
 0x9b3   :  { %v1327_v28 = vpop.f32.mrb[12].mxu1 }
 0x9b4   :  { %v1328_v33 = vadd.f32 %v1327_v28, %v2753_v42  ;;  %v2079_v37 = vpop.f32.mrb[13].mxu1 }
 0x9b6   :  { %1331 = vst [vmem:[%s2830_s5] sm:$0xff] %v1328_v33 }
 0x9b7   :  { %1344 = vsyncpa [#allocation3], 1 }
 0x9b8   :  { %1345 = vsyncpa [#allocation5], 1 }

</bundles_post_ra>
